<compile_context>
chip_gen: v6e
topology: v6e:2x2x1
jax: 0.10.0
libtpu: 0.0.40
codegen_flags: <defaults>
</compile_context>

<pallas_src>
import math
import functools

import jax
import jax.numpy as jnp
from jax.experimental import pallas as pl
from jax.experimental.pallas import tpu as pltpu


_SQRT_2_OVER_PI = math.sqrt(2.0 / math.pi)
_GELU_COEFF = 0.0044715  # Matches the reference PyTorch module exactly as written
                         # (standard tanh-GELU would use 0.044715).


def _gelu_custom(x):
    x3 = x * x * x  # cheaper than x ** 3 on the VPU
    return 0.5 * x * (1.0 + jnp.tanh(_SQRT_2_OVER_PI * (x + _GELU_COEFF * x3)))


def _round_up(a, b):
    return ((a + b - 1) // b) * b


def _chip_config():
    """Chip-aware tiling / VMEM defaults (resolved once per call, in Python)."""
    kind = ""
    try:
        kind = (getattr(jax.devices()[0], "device_kind", "") or "").lower()
    except Exception:
        pass
    if "v7" in kind:
        # 64 MiB VMEM / 2 TCs: leave headroom, shrink th, single-buffer x/b2,
        # and split rows so both TensorCores get work.
        return dict(tm=512, th=256, vmem_limit_bytes=52 * 1024 * 1024,
                    x_buffers=1, row_shards=2)
    if "v6" in kind or "trillium" in kind:
        return dict(tm=1024, th=1024, vmem_limit_bytes=100 * 1024 * 1024,
                    x_buffers=2, row_shards=1)
    if "v5e" in kind or "v5 lite" in kind or "v5lite" in kind:
        return dict(tm=512, th=1024, vmem_limit_bytes=100 * 1024 * 1024,
                    x_buffers=2, row_shards=1)
    # Unknown chip (v4/v5p/interpret/...): conservative.
    return dict(tm=512, th=512, vmem_limit_bytes=64 * 1024 * 1024,
                x_buffers=2, row_shards=1)


def _ffn_kernel(x_ref, w1_ref, b1_ref, w2_ref, b2_ref, o_ref, acc_ref, *, precision):
    # x_ref : (tm, Ep)   w1_ref: (Ep, th)   b1_ref: (1, th)
    # w2_ref: (th, Ep)   b2_ref: (1, Ep)    o_ref : (tm, Ep)
    # acc_ref: (tm, Ep) f32 scratch accumulated over the hidden (k) grid axis.
    k = pl.program_id(1)

    @pl.when(k == 0)
    def _init():
        # Fold the second bias into the accumulator -> epilogue is cast + store.
        acc_ref[...] = jnp.broadcast_to(
            b2_ref[...].astype(jnp.float32), acc_ref.shape)

    h = jnp.dot(x_ref[...], w1_ref[...],
                preferred_element_type=jnp.float32,
                precision=precision) + b1_ref[...]
    g = _gelu_custom(h)                                   # f32 VPU/EUP math
    acc_ref[...] += jnp.dot(g.astype(w2_ref.dtype), w2_ref[...],
                            preferred_element_type=jnp.float32,
                            precision=precision)

    @pl.when(k == pl.num_programs(1) - 1)
    def _store():
        o_ref[...] = acc_ref[...].astype(o_ref.dtype)


def prepare_params(w1, b1, w2, b2, *, mxu_dtype=jnp.bfloat16):
    """Pad weights/biases to 128-aligned shapes and cast ONCE (init time).

    w1: (E, 4E)  b1: (1, 4E) or (4E,)  w2: (4E, E)  b2: (1, E) or (E,)
    Zero padding is exact: GELU(0)=0 and the padded W2 rows are 0.
    """
    E, H = w1.shape
    assert w2.shape == (H, E)
    Ep = _round_up(E, 128)
    Hp = _round_up(H, 128)
    w1q = jnp.pad(w1, ((0, Ep - E), (0, Hp - H))).astype(mxu_dtype)
    b1f = jnp.pad(b1.reshape(1, H), ((0, 0), (0, Hp - H))).astype(jnp.float32)
    w2q = jnp.pad(w2, ((0, Hp - H), (0, Ep - E))).astype(mxu_dtype)
    b2f = jnp.pad(b2.reshape(1, E), ((0, 0), (0, Ep - E))).astype(jnp.float32)
    return w1q, b1f, w2q, b2f


@functools.partial(jax.jit, static_argnums=(5, 6, 7, 8, 9))
def _feed_forward_impl(x, w1q, b1f, w2q, b2f,
                       tm, th, vmem_limit_bytes, x_buffers, row_shards):
    B, S, E = x.shape
    M = B * S
    Ep, Hp = w1q.shape
    assert w2q.shape == (Hp, Ep)
    out_dtype = x.dtype
    mxu_dtype = w1q.dtype
    precision = (jax.lax.Precision.HIGHEST
                 if mxu_dtype == jnp.float32 else None)

    # Row tile: multiple of 16 (bf16 sublane packing); on multi-TC chips cap it
    # so the "parallel" row axis has >= row_shards tiles when M allows it.
    tm_eff = min(tm, _round_up(M, 16))
    if row_shards > 1:
        tm_eff = min(tm_eff, max(16, _round_up(-(-M // row_shards), 16)))
    Mp = _round_up(M, tm_eff)

    # Hidden tile: largest multiple of 128 <= th that divides Hp.
    th_eff = max(128, (min(th, Hp) // 128) * 128)
    while Hp % th_eff:
        th_eff -= 128

    # Per-call activation padding/cast only (weights already prepared).
    x2d = jnp.pad(x.reshape(M, E), ((0, Mp - M), (0, Ep - E))).astype(mxu_dtype)

    grid = (Mp // tm_eff, Hp // th_eff)  # (parallel rows, arbitrary hidden-K)

    # x and b2 block indices are constant along the inner k axis; on VMEM-tight
    # chips (v7x) single-buffer them to fund a bigger row tile.
    const_kwargs = {"pipeline_mode": pl.Buffered(1)} if x_buffers == 1 else {}

    in_specs = [
        pl.BlockSpec((tm_eff, Ep), lambda i, k: (i, 0), **const_kwargs),  # x
        pl.BlockSpec((Ep, th_eff), lambda i, k: (0, k)),                  # W1[:,k]
        pl.BlockSpec((1, th_eff), lambda i, k: (0, k)),                   # b1[k]
        pl.BlockSpec((th_eff, Ep), lambda i, k: (k, 0)),                  # W2[k,:]
        pl.BlockSpec((1, Ep), lambda i, k: (0, 0), **const_kwargs),       # b2
    ]

    # Advisory cost: weights are streamed once per row tile.
    w_bytes = (w1q.size + w2q.size) * jnp.dtype(mxu_dtype).itemsize
    bytes_accessed = ((Mp // tm_eff) * w_bytes
                      + x2d.size * jnp.dtype(mxu_dtype).itemsize
                      + Mp * Ep * jnp.dtype(out_dtype).itemsize)
    cost = pl.CostEstimate(flops=4 * Mp * Ep * Hp,
                           transcendentals=Mp * Hp,
                           bytes_accessed=bytes_accessed)

    out2d = pl.pallas_call(
        functools.partial(_ffn_kernel, precision=precision),
        out_shape=jax.ShapeDtypeStruct((Mp, Ep), out_dtype),
        grid_spec=pltpu.PrefetchScalarGridSpec(
            num_scalar_prefetch=0,
            grid=grid,
            in_specs=in_specs,
            out_specs=pl.BlockSpec((tm_eff, Ep), lambda i, k: (i, 0)),
            scratch_shapes=[pltpu.VMEM((tm_eff, Ep), jnp.float32)],
        ),
        compiler_params=pltpu.CompilerParams(
            dimension_semantics=("parallel", "arbitrary"),
            vmem_limit_bytes=vmem_limit_bytes,
        ),
        cost_estimate=cost,
    )(x2d, w1q, b1f, w2q, b2f)

    return out2d[:M, :E].reshape(B, S, E)


def feed_forward(x, w1q, b1f, w2q, b2f, *, tm=None, th=None):
    """x: (B, S, E).  Remaining args come from prepare_params()."""
    cfg = _chip_config()
    return _feed_forward_impl(
        x, w1q, b1f, w2q, b2f,
        tm if tm is not None else cfg["tm"],
        th if th is not None else cfg["th"],
        cfg["vmem_limit_bytes"], cfg["x_buffers"], cfg["row_shards"])


def init_params(key, embed_dim):
    """nn.Linear-shaped params, weights stored transposed: (in_features, out_features)."""
    hidden = 4 * embed_dim
    k1, k2, k3, k4 = jax.random.split(key, 4)
    lim1 = 1.0 / math.sqrt(embed_dim)
    lim2 = 1.0 / math.sqrt(hidden)
    w1 = jax.random.uniform(k1, (embed_dim, hidden), jnp.float32, -lim1, lim1)
    b1 = jax.random.uniform(k2, (1, hidden), jnp.float32, -lim1, lim1)
    w2 = jax.random.uniform(k3, (hidden, embed_dim), jnp.float32, -lim2, lim2)
    b2 = jax.random.uniform(k4, (1, embed_dim), jnp.float32, -lim2, lim2)
    return w1, b1, w2, b2


def _reference(x, w1, b1, w2, b2):
    h = x @ w1 + b1.reshape(-1)
    g = _gelu_custom(h)
    return g @ w2 + b2.reshape(-1)


if __name__ == "__main__":
    key = jax.random.PRNGKey(0)
    kx, kp = jax.random.split(key)

    batch, seq, embed_dim = 2, 8, 32
    x = jax.random.normal(kx, (batch, seq, embed_dim), jnp.float32)
    w1, b1, w2, b2 = init_params(kp, embed_dim)

    ref = _reference(x, w1, b1, w2, b2)

    # Exact-ish f32 MXU path (precision=HIGHEST): validates tiling/accumulation/padding.
    p_f32 = prepare_params(w1, b1, w2, b2, mxu_dtype=jnp.float32)
    out_f32 = jax.block_until_ready(feed_forward(x, *p_f32))
    assert out_f32.shape == (batch, seq, embed_dim)
    assert jnp.allclose(out_f32, ref, atol=1e-5, rtol=1e-5), "f32 mismatch vs reference"

    # Default fast path: weights pre-padded + pre-cast to bf16, f32 accumulate.
    p_bf16 = prepare_params(w1, b1, w2, b2)
    out_bf16 = jax.block_until_ready(feed_forward(x, *p_bf16))
    assert out_bf16.shape == (batch, seq, embed_dim)
    assert jnp.allclose(out_bf16, ref, atol=3e-2, rtol=3e-2), "bf16 mismatch vs reference"

    print("KERNEL_OK")
</pallas_src>

<mosaic_0001>
module attributes {stable_mosaic.version = 11 : i64} {
  func.func @_ffn_kernel(%arg0: i32, %arg1: i32, %arg2: memref<16x128xf32, #tpu.memory_space<vmem>>, %arg3: memref<128x128xf32, #tpu.memory_space<vmem>>, %arg4: memref<1x128xf32, #tpu.memory_space<vmem>>, %arg5: memref<128x128xf32, #tpu.memory_space<vmem>>, %arg6: memref<1x128xf32, #tpu.memory_space<vmem>>, %arg7: memref<16x128xf32, #tpu.memory_space<vmem>>, %arg8: memref<16x128xf32, #tpu.memory_space<vmem>>) attributes {dimension_semantics = [#tpu.dimension_semantics<parallel>, #tpu.dimension_semantics<arbitrary>], iteration_bounds = array<i64: 1, 1>, scalar_prefetch = 0 : i64, scratch_operands = 1 : i64, tpu.core_type = #tpu.core_type<tc>, window_params = [{transform_indices = @transform_0, window_bounds = array<i64: 16, 128>}, {transform_indices = @transform_1, window_bounds = array<i64: 128, 128>}, {transform_indices = @transform_2, window_bounds = array<i64: 1, 128>}, {transform_indices = @transform_3, window_bounds = array<i64: 128, 128>}, {pipeline_mode = #tpu.pipeline_mode<synchronous>, transform_indices = @transform_4, window_bounds = array<i64: 1, 128>}, {transform_indices = @transform_5, window_bounds = array<i64: 16, 128>}]} {
    %c0_i32 = arith.constant 0 : i32
    %0 = arith.cmpi eq, %arg1, %c0_i32 : i32
    %1 = arith.extui %0 : i1 to i32
    %c0_i32_0 = arith.constant 0 : i32
    %2 = arith.cmpi ne, %1, %c0_i32_0 : i32
    scf.if %2 {
      %c0_19 = arith.constant 0 : index
      %c0_20 = arith.constant 0 : index
      %30 = vector.load %arg6[%c0_19, %c0_20] : memref<1x128xf32, #tpu.memory_space<vmem>>, vector<1x128xf32>
      %31 = vector.shape_cast %30 : vector<1x128xf32> to vector<1x128xf32>
      %32 = vector.broadcast %31 : vector<1x128xf32> to vector<16x128xf32>
      %c0_21 = arith.constant 0 : index
      %c0_22 = arith.constant 0 : index
      %33 = vector.load %arg8[%c0_21, %c0_22] : memref<16x128xf32, #tpu.memory_space<vmem>>, vector<16x128xf32>
      tpu.vector_store %arg8[%c0_21, %c0_22], %32 {strides = array<i32>} : memref<16x128xf32, #tpu.memory_space<vmem>>, vector<16x128xf32>,
    } else {
    }
    %c0 = arith.constant 0 : index
    %c0_1 = arith.constant 0 : index
    %3 = vector.load %arg2[%c0, %c0_1] : memref<16x128xf32, #tpu.memory_space<vmem>>, vector<16x128xf32>
    %c0_2 = arith.constant 0 : index
    %c0_3 = arith.constant 0 : index
    %4 = vector.load %arg3[%c0_2, %c0_3] : memref<128x128xf32, #tpu.memory_space<vmem>>, vector<128x128xf32>
    %cst = arith.constant dense<0.000000e+00> : vector<16x128xf32>
    %5 = tpu.matmul %3, %4, %cst {dimension_numbers = #tpu.dot_dimension_numbers<[1], [0], [0], [1], [0, 0, 1, 1], [], []>, precision = #tpu.contract_precision<fp32>} : vector<16x128xf32>, vector<128x128xf32>, vector<16x128xf32> -> vector<16x128xf32>
    %c0_4 = arith.constant 0 : index
    %c0_5 = arith.constant 0 : index
    %6 = vector.load %arg4[%c0_4, %c0_5] : memref<1x128xf32, #tpu.memory_space<vmem>>, vector<1x128xf32>
    %7 = vector.broadcast %6 : vector<1x128xf32> to vector<16x128xf32>
    %8 = arith.addf %5, %7 : vector<16x128xf32>
    %9 = arith.mulf %8, %8 : vector<16x128xf32>
    %10 = arith.mulf %9, %8 : vector<16x128xf32>
    %cst_6 = arith.constant 5.000000e-01 : f32
    %11 = vector.broadcast %cst_6 : f32 to vector<16x128xf32>
    %12 = arith.mulf %11, %8 : vector<16x128xf32>
    %cst_7 = arith.constant 4.471500e-03 : f32
    %13 = vector.broadcast %cst_7 : f32 to vector<16x128xf32>
    %14 = arith.mulf %13, %10 : vector<16x128xf32>
    %15 = arith.addf %8, %14 : vector<16x128xf32>
    %cst_8 = arith.constant 0.797884583 : f32
    %16 = vector.broadcast %cst_8 : f32 to vector<16x128xf32>
    %17 = arith.mulf %16, %15 : vector<16x128xf32>
    %18 = math.tanh %17 : vector<16x128xf32>
    %cst_9 = arith.constant 1.000000e+00 : f32
    %19 = vector.broadcast %cst_9 : f32 to vector<16x128xf32>
    %20 = arith.addf %19, %18 : vector<16x128xf32>
    %21 = arith.mulf %12, %20 : vector<16x128xf32>
    %c0_10 = arith.constant 0 : index
    %c0_11 = arith.constant 0 : index
    %22 = vector.load %arg8[%c0_10, %c0_11] : memref<16x128xf32, #tpu.memory_space<vmem>>, vector<16x128xf32>
    %c0_12 = arith.constant 0 : index
    %c0_13 = arith.constant 0 : index
    %23 = vector.load %arg5[%c0_12, %c0_13] : memref<128x128xf32, #tpu.memory_space<vmem>>, vector<128x128xf32>
    %cst_14 = arith.constant dense<0.000000e+00> : vector<16x128xf32>
    %24 = tpu.matmul %21, %23, %cst_14 {dimension_numbers = #tpu.dot_dimension_numbers<[1], [0], [0], [1], [0, 0, 1, 1], [], []>, precision = #tpu.contract_precision<fp32>} : vector<16x128xf32>, vector<128x128xf32>, vector<16x128xf32> -> vector<16x128xf32>
    %25 = arith.addf %22, %24 : vector<16x128xf32>
    %c0_15 = arith.constant 0 : index
    %c0_16 = arith.constant 0 : index
    %26 = vector.load %arg8[%c0_15, %c0_16] : memref<16x128xf32, #tpu.memory_space<vmem>>, vector<16x128xf32>
    tpu.vector_store %arg8[%c0_15, %c0_16], %25 {strides = array<i32>} : memref<16x128xf32, #tpu.memory_space<vmem>>, vector<16x128xf32>,
    %c0_i32_17 = arith.constant 0 : i32
    %27 = arith.cmpi eq, %arg1, %c0_i32_17 : i32
    %28 = arith.extui %27 : i1 to i32
    %c0_i32_18 = arith.constant 0 : i32
    %29 = arith.cmpi ne, %28, %c0_i32_18 : i32
    scf.if %29 {
      %c0_19 = arith.constant 0 : index
      %c0_20 = arith.constant 0 : index
      %30 = vector.load %arg8[%c0_19, %c0_20] : memref<16x128xf32, #tpu.memory_space<vmem>>, vector<16x128xf32>
      %c0_21 = arith.constant 0 : index
      %c0_22 = arith.constant 0 : index
      %31 = vector.load %arg7[%c0_21, %c0_22] : memref<16x128xf32, #tpu.memory_space<vmem>>, vector<16x128xf32>
      tpu.vector_store %arg7[%c0_21, %c0_22], %30 {strides = array<i32>} : memref<16x128xf32, #tpu.memory_space<vmem>>, vector<16x128xf32>,
    } else {
    }
    return
  }
  func.func @transform_0(%arg0: i32, %arg1: i32) -> (i32, i32) {
    %c0_i32 = arith.constant 0 : i32
    %c0_i32_0 = arith.constant 0 : i32
    return %arg0, %c0_i32 : i32, i32
  }
  func.func @transform_1(%arg0: i32, %arg1: i32) -> (i32, i32) {
    %c0_i32 = arith.constant 0 : i32
    %c0_i32_0 = arith.constant 0 : i32
    return %c0_i32, %arg1 : i32, i32
  }
  func.func @transform_2(%arg0: i32, %arg1: i32) -> (i32, i32) {
    %c0_i32 = arith.constant 0 : i32
    %c0_i32_0 = arith.constant 0 : i32
    return %c0_i32, %arg1 : i32, i32
  }
  func.func @transform_3(%arg0: i32, %arg1: i32) -> (i32, i32) {
    %c0_i32 = arith.constant 0 : i32
    %c0_i32_0 = arith.constant 0 : i32
    return %arg1, %c0_i32 : i32, i32
  }
  func.func @transform_4(%arg0: i32, %arg1: i32) -> (i32, i32) {
    %c0_i32 = arith.constant 0 : i32
    %c0_i32_0 = arith.constant 0 : i32
    %c0_i32_1 = arith.constant 0 : i32
    return %c0_i32, %c0_i32_0 : i32, i32
  }
  func.func @transform_5(%arg0: i32, %arg1: i32) -> (i32, i32) {
    %c0_i32 = arith.constant 0 : i32
    %c0_i32_0 = arith.constant 0 : i32
    return %arg0, %c0_i32 : i32, i32
  }
}

</mosaic_0001>

<bundles_post_ra>
// kernel: _feed_forward_impl.1
= control target key start
LH: loop header
LB: loop body
LE: loop exit
PB: predicated region body
PF: predicated region fallthrough
CT: control target
= control target key end

     0   :  { %10 = vsyncpa [#allocation4], 0  ;;  %s2946_s0 = inlined_call_operand.vmem [shape: f32[16,128], index: 0, kind: input, shape index: {}]   ;;  %s2947_s1 = inlined_call_operand.hbm [shape: f32[128,128], index: 1, kind: input, shape index: {}]   ;;  %s2948_s2 = inlined_call_operand.vmem [shape: f32[1,128], index: 2, kind: input, shape index: {}]   ;;  %s2949_s3 = inlined_call_operand.hbm [shape: f32[128,128], index: 3, kind: input, shape index: {}]   ;;  %s2950_s4 = inlined_call_operand.vmem [shape: f32[1,128], index: 4, kind: input, shape index: {}]   ;;  %s2951_s5 = inlined_call_operand.vmem [shape: f32[16,128], index: 5, kind: output, shape index: {}]  }
   0x1   :  { %11 = vsyncpa [#allocation6], 0  ;;  %s2197_s18 = smov [#allocation3]  }
   0x2   :  { %s19_s19 = sshll.u32 %s2197_s18, 4  ;;  %s20_s19 = int_to_ptr.vmem [resolvable:$true] %s19_s19 }
   0x3   :  { %s2161_s20 = scalar_lea.vmem %s20_s19, 2048  ;;  %p2166_p1 = scmp.lt.s32.totalorder %s20_s19, %s20_s19 }
   0x4   :  { %p2162_p0 = scmp.ne.s32.totalorder %s20_s19, %s2161_s20  ;;  %p2167_p2 = scmp.lt.s32.totalorder %s2161_s20, %s2161_s20 }
   0x6   :  { %p2168_p3 = por %p2167_p2, %p2166_p1 }
   0x8   :  { %p2169_p4 = pnand %p2168_p3, %p2162_p0 }
   0xa   :  { %2172 = shalt.err (!%p2169_p4)
}
   0xb   :  { %s2198_s21 = smov 128   ;;  %s2199_s22 = smov 8  }
   0xc   :  { %25 = dma.hbm_to_vmem [thread:$0]  %s2947_s1, 2048, %s20_s19, [#allocation4], %s2198_s21, %s2198_s21, %s2199_s22  }
   0xd   :  { %s2200_s25 = smov [#allocation5]  }
   0xe   :  { %s33_s26 = sshll.u32 %s2200_s25, 4  ;;  %s34_s26 = int_to_ptr.vmem [resolvable:$true] %s33_s26 }
   0xf   :  { %s2181_s27 = scalar_lea.vmem %s34_s26, 2048  ;;  %p2186_p6 = scmp.lt.s32.totalorder %s34_s26, %s34_s26 }
  0x10   :  { %p2182_p5 = scmp.ne.s32.totalorder %s34_s26, %s2181_s27  ;;  %p2187_p7 = scmp.lt.s32.totalorder %s2181_s27, %s2181_s27 }
  0x12   :  { %p2188_p8 = por %p2187_p7, %p2186_p6 }
  0x14   :  { %p2189_p9 = pnand %p2188_p8, %p2182_p5 }
  0x16   :  { %2192 = shalt.err (!%p2189_p9)
}
  0x17   :  { %39 = dma.hbm_to_vmem [thread:$0]  %s2949_s3, 2048, %s34_s26, [#allocation6], %s2198_s21, %s2198_s21, %s2199_s22  }
  0x18   :  { %2193 = dma.done.wait [#allocation4], 2048  }
  0x19   :  { %2194 = vsyncadd [#allocation4], 4294965248 }
  0x1a   :  { %2195 = dma.done.wait [#allocation6], 2048  }
  0x1b   :  { %2196 = vsyncadd [#allocation6], 4294965248  ;;  %v78_v0 = vld [vmem:[#allocation3 + $0x78] sm:$0xff]  ;;  %v77_v1 = vld [vmem:[#allocation3 + $0x70] sm:$0xff] }
  0x1c   :  { %v76_v2 = vld [vmem:[#allocation3 + $0x68] sm:$0xff]  ;;  %v2237_v3 = vand.u32 4294901760, %v78_v0  ;;  %v2239_v4 = vand.u32 4294901760, %v77_v1  ;;  %v75_v6 = vld [vmem:[#allocation3 + $0x60] sm:$0xff]  ;;  %v74_v7 = vld [vmem:[#allocation3 + $0x58] sm:$0xff] }
  0x1d   :  { %v2241_v5 = vand.u32 4294901760, %v76_v2  ;;  %v73_v8 = vld [vmem:[#allocation3 + $0x50] sm:$0xff]  ;;  %v2243_v9 = vand.u32 4294901760, %v75_v6  ;;  %v2245_v10 = vand.u32 4294901760, %v74_v7  ;;  %v72_v12 = vld [vmem:[#allocation3 + $0x48] sm:$0xff]  ;;  %v71_v13 = vld [vmem:[#allocation3 + $0x40] sm:$0xff] }
  0x1e   :  { %v2247_v11 = vand.u32 4294901760, %v73_v8  ;;  %1725 = vmatprep.subr.mxu0 %v2237_v3  ;;  %v2251_v14 = vsub.f32 %v78_v0, %v2237_v3  ;;  %v2254_v15 = vsub.f32 %v77_v1, %v2239_v4  ;;  %v2256_v16 = vand.u32 4294901760, %v72_v12  ;;  %v70_v18 = vld [vmem:[#allocation3 + $0x38] sm:$0xff]  ;;  %v69_v25 = vld [vmem:[#allocation3 + $0x30] sm:$0xff]  ;;  %v68_v35 = vld [vmem:[#allocation3 + $0x28] sm:$0xff] }
  0x1f   :  { %v2259_v17 = vsub.f32 %v76_v2, %v2241_v5  ;;  %1726 = vmatpush3.msra.mxu0 %v2237_v3  ;;  %v2263_v19 = vsub.f32 %v75_v6, %v2243_v9  ;;  %v2266_v20 = vsub.f32 %v74_v7, %v2245_v10  ;;  %v2278_v24 = vand.u32 4294901760, %v71_v13  ;;  %v67_v40 = vld [vmem:[#allocation3 + $0x20] sm:$0xff]  ;;  %v66_v48 = vld [vmem:[#allocation3 + $0x18] sm:$0xff]  ;;  %v62_v54 = vld [vmem:[%s2946_s0 + $0x8] sm:$0xff] }
  0x20   :  { %1727 = vmatprep.subr.mxu0 %v2239_v4  ;;  %v2270_v21 = vand.u32 4294901760, %v2251_v14  ;;  %v2273_v22 = vand.u32 4294901760, %v2254_v15  ;;  %v2284_v27 = vand.u32 4294901760, %v70_v18  ;;  %v2290_v29 = vsub.f32 %v73_v8, %v2247_v11  ;;  %v61_v49 = vld [vmem:[%s2946_s0] sm:$0xff]  ;;  %v65_v59 = vld [vmem:[#allocation3 + $0x10] sm:$0xff]  ;;  %v64_v2 = vld [vmem:[#allocation3 + $0x8] sm:$0xff] }
  0x21   :  { %v2276_v23 = vand.u32 4294901760, %v2259_v17  ;;  %1728 = vmatpush3.msra.mxu0 %v2239_v4  ;;  %v2282_v26 = vand.u32 4294901760, %v2263_v19  ;;  %v2287_v28 = vand.u32 4294901760, %v2266_v20  ;;  %v2300_v33 = vsub.f32 %v72_v12, %v2256_v16 }
  0x22   :  { %1729 = vmatprep.subr.mxu0 %v2241_v5  ;;  %v191_v30 = vsub.f32 %v2251_v14, %v2270_v21  ;;  %v198_v31 = vsub.f32 %v2254_v15, %v2273_v22  ;;  %v2303_v34 = vand.u32 4294901760, %v69_v25  ;;  %v2309_v39 = vand.u32 4294901760, %v2290_v29 }
  0x23   :  { %v205_v32 = vsub.f32 %v2259_v17, %v2276_v23  ;;  %1730 = vmatpush3.msra.mxu0 %v2241_v5  ;;  %v212_v38 = vsub.f32 %v2263_v19, %v2282_v26  ;;  %v219_v41 = vsub.f32 %v2266_v20, %v2287_v28  ;;  %v2315_v42 = vand.u32 4294901760, %v2300_v33 }
  0x24   :  { %1731 = vmatprep.subr.mxu0 %v2243_v9  ;;  %v192_v36 = vand.u32 4294901760, %v191_v30  ;;  %v199_v37 = vand.u32 4294901760, %v198_v31  ;;  %v2318_v43 = vsub.f32 %v71_v13, %v2278_v24  ;;  %v2321_v45 = vand.u32 4294901760, %v68_v35 }
  0x25   :  { %1732 = vmatpush3.msra.mxu0 %v2243_v9  ;;  %v206_v44 = vand.u32 4294901760, %v205_v32  ;;  %v2324_v46 = vsub.f32 %v70_v18, %v2284_v27  ;;  %v2327_v47 = vand.u32 4294901760, %v67_v40  ;;  %v213_v50 = vand.u32 4294901760, %v212_v38  ;;  %v63_v18 = vld [vmem:[#allocation3] sm:$0xff] }
  0x26   :  { %1733 = vmatprep.subr.mxu0 %v2245_v10  ;;  %1760 = vmatprep.subr.mxu1 %v192_v36  ;;  %v226_v51 = vsub.f32 %v2290_v29, %v2309_v39  ;;  %v2336_v52 = vand.u32 4294901760, %v2318_v43  ;;  %v2339_v53 = vsub.f32 %v69_v25, %v2303_v34  ;;  %v220_v55 = vand.u32 4294901760, %v219_v41 }
  0x27   :  { %1734 = vmatpush3.msra.mxu0 %v2245_v10  ;;  %1761 = vmatpush3.msra.mxu1 %v192_v36  ;;  %v233_v56 = vsub.f32 %v2300_v33, %v2315_v42  ;;  %v2348_v57 = vand.u32 4294901760, %v66_v48  ;;  %v2351_v58 = vand.u32 4294901760, %v2324_v46  ;;  %v2354_v60 = vsub.f32 %v68_v35, %v2321_v45 }
  0x28   :  { %1735 = vmatprep.subr.mxu0 %v2247_v11  ;;  %1762 = vmatprep.subr.mxu1 %v199_v37  ;;  %v2356_v61 = vand.u32 4294901760, %v61_v49  ;;  %v2359_v62 = vand.u32 4294901760, %v62_v54  ;;  %v227_v63 = vand.u32 4294901760, %v226_v51  ;;  %v240_v0 = vsub.f32 %v2318_v43, %v2336_v52 }
  0x29   :  { %1736 = vmatpush3.msra.mxu0 %v2247_v11  ;;  %1763 = vmatpush3.msra.mxu1 %v199_v37  ;;  %v2365_v1 = vand.u32 4294901760, %v2339_v53  ;;  %v2368_v6 = vsub.f32 %v67_v40, %v2327_v47  ;;  %v234_v7 = vand.u32 4294901760, %v233_v56  ;;  %v2371_v8 = vand.u32 4294901760, %v65_v59 }
  0x2a   :  { %1737 = vmatprep.subr.mxu0 %v2256_v16  ;;  %1764 = vmatprep.subr.mxu1 %v206_v44  ;;  %v247_v12 = vsub.f32 %v2324_v46, %v2351_v58  ;;  %v2377_v13 = vand.u32 4294901760, %v2354_v60  ;;  %v2380_v25 = vsub.f32 %v61_v49, %v2356_v61  ;;  %v2383_v30 = vsub.f32 %v66_v48, %v2348_v57 }
  0x2b   :  { %1738 = vmatpush3.msra.mxu0 %v2256_v16  ;;  %1765 = vmatpush3.msra.mxu1 %v206_v44  ;;  %v2386_v31 = vand.u32 4294901760, %v64_v2  ;;  %v2389_v32 = vsub.f32 %v62_v54, %v2359_v62  ;;  %v241_v35 = vand.u32 4294901760, %v240_v0  ;;  %v254_v36 = vsub.f32 %v2339_v53, %v2365_v1 }
  0x2c   :  { %1739 = vmatprep.subr.mxu0 %v2278_v24  ;;  %1766 = vmatprep.subr.mxu1 %v213_v50  ;;  %v2395_v37 = vand.u32 4294901760, %v2368_v6  ;;  %v2398_v38 = vand.u32 4294901760, %v63_v18  ;;  %v2401_v40 = vsub.f32 %v65_v59, %v2371_v8  ;;  %v248_v41 = vand.u32 4294901760, %v247_v12 }
  0x2d   :  { %1740 = vmatpush3.msra.mxu0 %v2278_v24  ;;  %1767 = vmatpush3.msra.mxu1 %v213_v50  ;;  %v261_v44 = vsub.f32 %v2354_v60, %v2377_v13  ;;  %v2953_v48 = vand.u32 4294901760, %v2380_v25  ;;  %v2408_v49 = vand.u32 4294901760, %v2383_v30  ;;  %v2952_v50 = vand.u32 4294901760, %v2389_v32 }
  0x2e   :  { %1741 = vmatprep.subr.mxu0 %v2284_v27  ;;  %1768 = vmatprep.subr.mxu1 %v220_v55  ;;  %v2413_v51 = vsub.f32 %v64_v2, %v2386_v31  ;;  %v255_v54 = vand.u32 4294901760, %v254_v36  ;;  %v2420_v56 = vand.u32 4294901760, %v2401_v40  ;;  %v2423_v59 = vsub.f32 %v63_v18, %v2398_v38 }
  0x2f   :  { %1742 = vmatpush3.msra.mxu0 %v2284_v27  ;;  %1769 = vmatpush3.msra.mxu1 %v220_v55  ;;  %v268_v55 = vsub.f32 %v2368_v6, %v2395_v37  ;;  %v170_v0 = vsub.f32 %v2380_v25, %v2953_v48  ;;  %v275_v2 = vsub.f32 %v2383_v30, %v2408_v49 }
  0x30   :  { %1743 = vmatprep.subr.mxu0 %v2303_v34  ;;  %1770 = vmatprep.subr.mxu1 %v227_v63  ;;  %v2436_v12 = vand.u32 4294901760, %v2413_v51  ;;  %v2443_v36 = vand.u32 4294901760, %v2423_v59 }
  0x31   :  { %1744 = vmatpush3.msra.mxu0 %v2303_v34  ;;  %1771 = vmatpush3.msra.mxu1 %v227_v63  ;;  %v262_v63 = vand.u32 4294901760, %v261_v44  ;;  %v269_v18 = vand.u32 4294901760, %v268_v55  ;;  %v276_v44 = vand.u32 4294901760, %v275_v2  ;;  %v795_v2 = vld [vmem:[#allocation5 + $0x28] sm:$0xff] }
  0x32   :  { %1745 = vmatprep.subr.mxu0 %v2321_v45  ;;  %1772 = vmatprep.subr.mxu1 %v234_v7  ;;  %v289_v55 = vsub.f32 %v2413_v51, %v2436_v12  ;;  %v296_v48 = vsub.f32 %v2423_v59, %v2443_v36 }
  0x33   :  { %1746 = vmatpush3.msra.mxu0 %v2321_v45  ;;  %1773 = vmatpush3.msra.mxu1 %v234_v7  ;;  %v180_v7 = vsub.f32 %v2389_v32, %v2952_v50 }
  0x34   :  { %1747 = vmatprep.subr.mxu0 %v2327_v47  ;;  %1774 = vmatprep.subr.mxu1 %v241_v35 }
  0x35   :  { %1748 = vmatpush3.msra.mxu0 %v2327_v47  ;;  %1775 = vmatpush3.msra.mxu1 %v241_v35  ;;  %v282_v35 = vsub.f32 %v2401_v40, %v2420_v56  ;;  %v181_v50 = vand.u32 4294901760, %v180_v7 }
  0x36   :  { %1749 = vmatprep.subr.mxu0 %v2348_v57  ;;  %1776 = vmatprep.subr.mxu1 %v248_v41 }
  0x37   :  { %1750 = vmatpush3.msra.mxu0 %v2348_v57  ;;  %1777 = vmatpush3.msra.mxu1 %v248_v41  ;;  %v171_v41 = vand.u32 4294901760, %v170_v0  ;;  %v297_v0 = vand.u32 4294901760, %v296_v48  ;;  %v796_v48 = vld [vmem:[#allocation5 + $0x30] sm:$0xff] }
  0x38   :  { %1751 = vmatprep.subr.mxu0 %v2371_v8  ;;  %1778 = vmatprep.subr.mxu1 %v255_v54 }
  0x39   :  { %1752 = vmatpush3.msra.mxu0 %v2371_v8  ;;  %1779 = vmatpush3.msra.mxu1 %v255_v54  ;;  %v283_v54 = vand.u32 4294901760, %v282_v35  ;;  %v2700_v35 = vand.u32 4294901760, %v795_v2 }
  0x3a   :  { %1753 = vmatprep.subr.mxu0 %v2386_v31  ;;  %1780 = vmatprep.subr.mxu1 %v262_v63 }
  0x3b   :  { %1754 = vmatpush3.msra.mxu0 %v2386_v31  ;;  %1781 = vmatpush3.msra.mxu1 %v262_v63  ;;  %v290_v63 = vand.u32 4294901760, %v289_v55 }
  0x3c   :  { %1755 = vmatprep.subr.mxu0 %v2398_v38  ;;  %1782 = vmatprep.subr.mxu1 %v269_v18 }
  0x3d   :  { %1756 = vmatpush3.msra.mxu0 %v2398_v38  ;;  %1783 = vmatpush3.msra.mxu1 %v269_v18 }
  0x3e   :  { %1757 = vmatprep.mubr.f32.mxu0 %v171_v41  ;;  %1784 = vmatprep.subr.mxu1 %v276_v44  ;;  %v794_v41 = vld [vmem:[#allocation5 + $0x20] sm:$0xff] }
  0x3f   :  { %1795 = vmatprep.subr.mxu0 %v2251_v14  ;;  %1758 = vmatmul.mubr.f32.vlgmr.msra.gmra.mxu0 %v181_v50 }
  0x40   :  { %1785 = vmatpush3.msra.mxu1 %v276_v44  ;;  %1796 = vmatpush3.msra.mxu0 %v2251_v14  ;;  %v2976_v14 = vand.u32 4294901760, %v2380_v25 }
  0x41   :  { %1786 = vmatprep.subr.mxu1 %v283_v54  ;;  %1797 = vmatprep.subr.mxu0 %v2254_v15 }
  0x42   :  { %1787 = vmatpush3.msra.mxu1 %v283_v54  ;;  %1798 = vmatpush3.msra.mxu0 %v2254_v15  ;;  %v2977_v15 = vand.u32 4294901760, %v2389_v32  ;;  %v2710_v54 = vsub.f32 %v795_v2, %v2700_v35 }
  0x43   :  { %1788 = vmatprep.subr.mxu1 %v290_v63  ;;  %1799 = vmatprep.subr.mxu0 %v2259_v17 }
  0x44   :  { %1789 = vmatpush3.msra.mxu1 %v290_v63  ;;  %1800 = vmatpush3.msra.mxu0 %v2259_v17  ;;  %v2712_v63 = vand.u32 4294901760, %v794_v41 }
  0x45   :  { %1790 = vmatprep.subr.mxu1 %v297_v0  ;;  %1801 = vmatprep.subr.mxu0 %v2263_v19 }
  0x46   :  { %1791 = vmatpush3.msra.mxu1 %v297_v0  ;;  %1792 = vmatprep.mubr.f32.mxu1 %v2356_v61  ;;  %v793_v0 = vld [vmem:[#allocation5 + $0x18] sm:$0xff] }
  0x47   :  { %1802 = vmatpush3.msra.mxu0 %v2263_v19  ;;  %1793 = vmatmul.mubr.f32.vlgmr.msra.gmra.mxu1 %v2359_v62 }
  0x48   :  { %1803 = vmatprep.subr.mxu0 %v2266_v20  ;;  %1830 = vmatprep.subr.mxu1 %v2237_v3 }
  0x49   :  { %1804 = vmatpush3.msra.mxu0 %v2266_v20  ;;  %1831 = vmatpush3.msra.mxu1 %v2237_v3  ;;  %v802_v20 = vld [vmem:[#allocation5 + $0x60] sm:$0xff] }
  0x4a   :  { %1805 = vmatprep.subr.mxu0 %v2290_v29  ;;  %1832 = vmatprep.subr.mxu1 %v2239_v4 }
  0x4b   :  { %1806 = vmatpush3.msra.mxu0 %v2290_v29  ;;  %1833 = vmatpush3.msra.mxu1 %v2239_v4 }
  0x4c   :  { %1807 = vmatprep.subr.mxu0 %v2300_v33  ;;  %1834 = vmatprep.subr.mxu1 %v2241_v5 }
  0x4d   :  { %1808 = vmatpush3.msra.mxu0 %v2300_v33  ;;  %1835 = vmatpush3.msra.mxu1 %v2241_v5 }
  0x4e   :  { %1809 = vmatprep.subr.mxu0 %v2318_v43  ;;  %1836 = vmatprep.subr.mxu1 %v2243_v9 }
  0x4f   :  { %1810 = vmatpush3.msra.mxu0 %v2318_v43  ;;  %1837 = vmatpush3.msra.mxu1 %v2243_v9 }
  0x50   :  { %1811 = vmatprep.subr.mxu0 %v2324_v46  ;;  %1838 = vmatprep.subr.mxu1 %v2245_v10 }
  0x51   :  { %1812 = vmatpush3.msra.mxu0 %v2324_v46  ;;  %1839 = vmatpush3.msra.mxu1 %v2245_v10 }
  0x52   :  { %1813 = vmatprep.subr.mxu0 %v2339_v53  ;;  %1840 = vmatprep.subr.mxu1 %v2247_v11 }
  0x53   :  { %1814 = vmatpush3.msra.mxu0 %v2339_v53  ;;  %1841 = vmatpush3.msra.mxu1 %v2247_v11 }
  0x54   :  { %1815 = vmatprep.subr.mxu0 %v2354_v60  ;;  %1842 = vmatprep.subr.mxu1 %v2256_v16 }
  0x55   :  { %1816 = vmatpush3.msra.mxu0 %v2354_v60  ;;  %1843 = vmatpush3.msra.mxu1 %v2256_v16 }
  0x56   :  { %1817 = vmatprep.subr.mxu0 %v2368_v6  ;;  %1844 = vmatprep.subr.mxu1 %v2278_v24 }
  0x57   :  { %1818 = vmatpush3.msra.mxu0 %v2368_v6  ;;  %1845 = vmatpush3.msra.mxu1 %v2278_v24 }
  0x58   :  { %1819 = vmatprep.subr.mxu0 %v2383_v30  ;;  %1846 = vmatprep.subr.mxu1 %v2284_v27 }
  0x59   :  { %1820 = vmatpush3.msra.mxu0 %v2383_v30  ;;  %1847 = vmatpush3.msra.mxu1 %v2284_v27  ;;  %v797_v30 = vld [vmem:[#allocation5 + $0x38] sm:$0xff] }
  0x5a   :  { %1821 = vmatprep.subr.mxu0 %v2401_v40  ;;  %1848 = vmatprep.subr.mxu1 %v2303_v34 }
  0x5b   :  { %1822 = vmatpush3.msra.mxu0 %v2401_v40  ;;  %1849 = vmatpush3.msra.mxu1 %v2303_v34 }
  0x5c   :  { %1823 = vmatprep.subr.mxu0 %v2413_v51  ;;  %1850 = vmatprep.subr.mxu1 %v2321_v45 }
  0x5d   :  { %1824 = vmatpush3.msra.mxu0 %v2413_v51  ;;  %1851 = vmatpush3.msra.mxu1 %v2321_v45 }
  0x5e   :  { %1825 = vmatprep.subr.mxu0 %v2423_v59  ;;  %1852 = vmatprep.subr.mxu1 %v2327_v47 }
  0x5f   :  { %1826 = vmatpush3.msra.mxu0 %v2423_v59  ;;  %1827 = vmatprep.mubr.f32.mxu0 %v2380_v25  ;;  %v2692_v59 = vand.u32 4294901760, %v796_v48 }
  0x60   :  { %1853 = vmatpush3.msra.mxu1 %v2327_v47  ;;  %1828 = vmatmul.mubr.f32.vlgmr.msra.gmra.mxu0 %v2389_v32 }
  0x61   :  { %1854 = vmatprep.subr.mxu1 %v2348_v57  ;;  %1865 = vmatprep.subr.mxu0 %v2270_v21 }
  0x62   :  { %1855 = vmatpush3.msra.mxu1 %v2348_v57  ;;  %1866 = vmatpush3.msra.mxu0 %v2270_v21 }
  0x63   :  { %1856 = vmatprep.subr.mxu1 %v2371_v8  ;;  %1867 = vmatprep.subr.mxu0 %v2273_v22 }
  0x64   :  { %1857 = vmatpush3.msra.mxu1 %v2371_v8  ;;  %1868 = vmatpush3.msra.mxu0 %v2273_v22 }
  0x65   :  { %1858 = vmatprep.subr.mxu1 %v2386_v31  ;;  %1869 = vmatprep.subr.mxu0 %v2276_v23 }
  0x66   :  { %1859 = vmatpush3.msra.mxu1 %v2386_v31  ;;  %1870 = vmatpush3.msra.mxu0 %v2276_v23 }
  0x67   :  { %1860 = vmatprep.subr.mxu1 %v2398_v38  ;;  %1871 = vmatprep.subr.mxu0 %v2282_v26 }
  0x68   :  { %1861 = vmatpush3.msra.mxu1 %v2398_v38  ;;  %1862 = vmatprep.mubr.f32.mxu1 %v2976_v14  ;;  %v792_v14 = vld [vmem:[#allocation5 + $0x10] sm:$0xff] }
  0x69   :  { %1872 = vmatpush3.msra.mxu0 %v2282_v26  ;;  %1863 = vmatmul.mubr.f32.vlgmr.msra.gmra.mxu1 %v2977_v15  ;;  %v801_v26 = vld [vmem:[#allocation5 + $0x58] sm:$0xff]  ;;  %v791_v15 = vld [vmem:[#allocation5 + $0x8] sm:$0xff] }
  0x6a   :  { %1873 = vmatprep.subr.mxu0 %v2287_v28  ;;  %1900 = vmatprep.subr.mxu1 %v2237_v3 }
  0x6b   :  { %1874 = vmatpush3.msra.mxu0 %v2287_v28  ;;  %1901 = vmatpush3.msra.mxu1 %v2237_v3  ;;  %v805_v3 = vld [vmem:[#allocation5 + $0x78] sm:$0xff] }
  0x6c   :  { %1875 = vmatprep.subr.mxu0 %v2309_v39  ;;  %1902 = vmatprep.subr.mxu1 %v2239_v4 }
  0x6d   :  { %1876 = vmatpush3.msra.mxu0 %v2309_v39  ;;  %1903 = vmatpush3.msra.mxu1 %v2239_v4  ;;  %v2593_v4 = vand.u32 4294901760, %v805_v3  ;;  %v800_v39 = vld [vmem:[#allocation5 + $0x50] sm:$0xff] }
  0x6e   :  { %1877 = vmatprep.subr.mxu0 %v2315_v42  ;;  %1904 = vmatprep.subr.mxu1 %v2241_v5  ;;  %v2641_v46 = vand.u32 4294901760, %v800_v39 }
  0x6f   :  { %1878 = vmatpush3.msra.mxu0 %v2315_v42  ;;  %1905 = vmatpush3.msra.mxu1 %v2241_v5  ;;  %v804_v5 = vld [vmem:[#allocation5 + $0x70] sm:$0xff] }
  0x70   :  { %1879 = vmatprep.subr.mxu0 %v2336_v52  ;;  %1906 = vmatprep.subr.mxu1 %v2243_v9 }
  0x71   :  { %1880 = vmatpush3.msra.mxu0 %v2336_v52  ;;  %1907 = vmatpush3.msra.mxu1 %v2243_v9  ;;  %v2596_v9 = vsub.f32 %v805_v3, %v2593_v4  ;;  %v799_v52 = vld [vmem:[#allocation5 + $0x48] sm:$0xff] }
  0x72   :  { %1881 = vmatprep.subr.mxu0 %v2351_v58  ;;  %1908 = vmatprep.subr.mxu1 %v2245_v10  ;;  %v2652_v60 = vand.u32 4294901760, %v799_v52 }
  0x73   :  { %1882 = vmatpush3.msra.mxu0 %v2351_v58  ;;  %1909 = vmatpush3.msra.mxu1 %v2245_v10  ;;  %v2598_v10 = vand.u32 4294901760, %v804_v5  ;;  %v2650_v58 = vsub.f32 %v800_v39, %v2641_v46 }
  0x74   :  { %1883 = vmatprep.subr.mxu0 %v2365_v1  ;;  %1910 = vmatprep.subr.mxu1 %v2247_v11 }
  0x75   :  { %1884 = vmatpush3.msra.mxu0 %v2365_v1  ;;  %1911 = vmatpush3.msra.mxu1 %v2247_v11  ;;  %v803_v11 = vld [vmem:[#allocation5 + $0x68] sm:$0xff]  ;;  %v2606_v17 = vsub.f32 %v804_v5, %v2598_v10  ;;  %v2660_v6 = vand.u32 4294901760, %v2650_v58  ;;  %v2718_v5 = vand.u32 4294901760, %v793_v0 }
  0x76   :  { %1885 = vmatprep.subr.mxu0 %v2377_v13  ;;  %1912 = vmatprep.subr.mxu1 %v2256_v16  ;;  %v2608_v19 = vand.u32 4294901760, %v803_v11 }
  0x77   :  { %1886 = vmatpush3.msra.mxu0 %v2377_v13  ;;  %1913 = vmatpush3.msra.mxu1 %v2256_v16  ;;  %v2603_v16 = vand.u32 4294901760, %v2596_v9  ;;  %v2615_v22 = vand.u32 4294901760, %v2606_v17  ;;  %2978 = vst [vmem:[#allocation9_spill] sm:$0xff] %v2660_v6 }
  0x78   :  { %1887 = vmatprep.subr.mxu0 %v2395_v37  ;;  %1914 = vmatprep.subr.mxu1 %v2278_v24  ;;  %v2618_v23 = vsub.f32 %v803_v11, %v2608_v19  ;;  %v2720_v11 = vand.u32 4294901760, %v792_v14 }
  0x79   :  { %1888 = vmatpush3.msra.mxu0 %v2395_v37  ;;  %1915 = vmatpush3.msra.mxu1 %v2278_v24  ;;  %v911_v21 = vsub.f32 %v2596_v9, %v2603_v16  ;;  %v2620_v24 = vand.u32 4294901760, %v802_v20  ;;  %v918_v28 = vsub.f32 %v2606_v17, %v2615_v22 }
  0x7a   :  { %1889 = vmatprep.subr.mxu0 %v2408_v49  ;;  %1916 = vmatprep.subr.mxu1 %v2284_v27  ;;  %v2627_v29 = vand.u32 4294901760, %v2618_v23 }
  0x7b   :  { %1890 = vmatpush3.msra.mxu0 %v2408_v49  ;;  %1917 = vmatpush3.msra.mxu1 %v2284_v27  ;;  %v912_v27 = vand.u32 4294901760, %v911_v21  ;;  %v2630_v33 = vsub.f32 %v802_v20, %v2620_v24  ;;  %v919_v42 = vand.u32 4294901760, %v918_v28  ;;  %v2723_v20 = vand.u32 4294901760, %v791_v15  ;;  %v790_v21 = vld [vmem:[#allocation5] sm:$0xff] }
  0x7c   :  { %1891 = vmatprep.subr.mxu0 %v2420_v56  ;;  %1918 = vmatprep.subr.mxu1 %v2303_v34  ;;  %v925_v43 = vsub.f32 %v2618_v23, %v2627_v29  ;;  %v2729_v28 = vsub.f32 %v794_v41, %v2712_v63  ;;  %v2732_v39 = vand.u32 4294901760, %v790_v21 }
  0x7d   :  { %1892 = vmatpush3.msra.mxu0 %v2420_v56  ;;  %1919 = vmatpush3.msra.mxu1 %v2303_v34  ;;  %v2633_v34 = vand.u32 4294901760, %v801_v26 }
  0x7e   :  { %1893 = vmatprep.subr.mxu0 %v2436_v12  ;;  %1920 = vmatprep.subr.mxu1 %v2321_v45  ;;  %v926_v53 = vand.u32 4294901760, %v925_v43  ;;  %v2737_v43 = vsub.f32 %v793_v0, %v2718_v5 }
  0x7f   :  { %1894 = vmatpush3.msra.mxu0 %v2436_v12  ;;  %1921 = vmatpush3.msra.mxu1 %v2321_v45  ;;  %v2639_v45 = vand.u32 4294901760, %v2630_v33 }
  0x80   :  { %1895 = vmatprep.subr.mxu0 %v2443_v36  ;;  %1922 = vmatprep.subr.mxu1 %v2327_v47 }
  0x81   :  { %1896 = vmatpush3.msra.mxu0 %v2443_v36  ;;  %1897 = vmatprep.mubr.f32.mxu0 %v2356_v61  ;;  %v2704_v36 = vsub.f32 %v796_v48, %v2692_v59 }
  0x82   :  { %1923 = vmatpush3.msra.mxu1 %v2327_v47  ;;  %1898 = vmatmul.mubr.f32.vlgmr.msra.gmra.mxu0 %v2359_v62  ;;  %v2644_v47 = vsub.f32 %v801_v26, %v2633_v34 }
  0x83   :  { %1924 = vmatprep.subr.mxu1 %v2348_v57  ;;  %1932 = vmatprep.mubr.f32.mxu1 %v2356_v61  ;;  %v2716_v3 = vand.u32 4294901760, %v2704_v36 }
  0x84   :  { %1925 = vmatpush3.msra.mxu1 %v2348_v57  ;;  %1935 = vmatprep.subr.mxu0 %v2593_v4  ;;  %v932_v57 = vsub.f32 %v2630_v33, %v2639_v45  ;;  %v2656_v61 = vand.u32 4294901760, %v2644_v47 }
  0x85   :  { %1926 = vmatprep.subr.mxu1 %v2371_v8  ;;  %1936 = vmatpush3.msra.mxu0 %v2593_v4  ;;  %2982 = vst [vmem:[#allocation13_spill] sm:$0xff] %v2716_v3 }
  0x86   :  { %1927 = vmatpush3.msra.mxu1 %v2371_v8  ;;  %1937 = vmatprep.subr.mxu0 %v2598_v10  ;;  %v933_v1 = vand.u32 4294901760, %v932_v57  ;;  %v2663_v8 = vsub.f32 %v799_v52, %v2652_v60  ;;  %v939_v25 = vsub.f32 %v2644_v47, %v2656_v61  ;;  %v2740_v52 = vsub.f32 %v792_v14, %v2720_v11 }
  0x87   :  { %1928 = vmatprep.subr.mxu1 %v2386_v31  ;;  %1938 = vmatpush3.msra.mxu0 %v2598_v10 }
  0x88   :  { %1929 = vmatpush3.msra.mxu1 %v2386_v31  ;;  %1939 = vmatprep.subr.mxu0 %v2608_v19  ;;  %v946_v31 = vsub.f32 %v2650_v58, %v2660_v6  ;;  %v2674_v32 = vand.u32 4294901760, %v2663_v8  ;;  %v940_v40 = vand.u32 4294901760, %v939_v25 }
  0x89   :  { %1930 = vmatprep.subr.mxu1 %v2398_v38  ;;  %1940 = vmatpush3.msra.mxu0 %v2608_v19 }
  0x8a   :  { %1931 = vmatpush3.msra.mxu1 %v2398_v38  ;;  %1941 = vmatprep.subr.mxu0 %v2620_v24  ;;  %2979 = vst [vmem:[#allocation10_spill] sm:$0xff] %v2674_v32  ;;  %v2679_v38 = vand.u32 4294901760, %v797_v30  ;;  %v947_v49 = vand.u32 4294901760, %v946_v31  ;;  %v953_v50 = vsub.f32 %v2663_v8, %v2674_v32  ;;  %v2758_v31 = vand.u32 4294901760, %v2740_v52 }
  0x8b   :  { %1933 = vmatmul.mubr.f32.vlgmr.msra.gmra.mxu1 %v2359_v62  ;;  %1942 = vmatpush3.msra.mxu0 %v2620_v24  ;;  %v798_v62 = vld [vmem:[#allocation5 + $0x40] sm:$0xff] }
  0x8c   :  { %1970 = vmatprep.subr.mxu1 %v912_v27  ;;  %1943 = vmatprep.subr.mxu0 %v2633_v34  ;;  %v2665_v13 = vand.u32 4294901760, %v798_v62  ;;  %v2689_v56 = vsub.f32 %v797_v30, %v2679_v38  ;;  %v954_v7 = vand.u32 4294901760, %v953_v50  ;;  %v2755_v30 = vand.u32 4294901760, %v2737_v43  ;;  %2986 = vst [vmem:[#allocation17_spill] sm:$0xff] %v2758_v31 }
  0x8d   :  { %1971 = vmatpush3.msra.mxu1 %v912_v27  ;;  %1944 = vmatpush3.msra.mxu0 %v2633_v34  ;;  %v2726_v27 = vand.u32 4294901760, %v2710_v54  ;;  %v1002_v2 = vsub.f32 %v2740_v52, %v2758_v31 }
  0x8e   :  { %1972 = vmatprep.subr.mxu1 %v919_v42  ;;  %1945 = vmatprep.subr.mxu0 %v2641_v46  ;;  %v2677_v37 = vsub.f32 %v798_v62, %v2665_v13  ;;  %v2698_v18 = vand.u32 4294901760, %v2689_v56  ;;  %v2748_v62 = vand.u32 4294901760, %v2729_v28  ;;  %2985 = vst [vmem:[#allocation16_spill] sm:$0xff] %v2755_v30  ;;  %v995_v50 = vsub.f32 %v2737_v43, %v2755_v30 }
  0x8f   :  { %1973 = vmatpush3.msra.mxu1 %v919_v42  ;;  %1946 = vmatpush3.msra.mxu0 %v2641_v46  ;;  %2983 = vst [vmem:[#allocation14_spill] sm:$0xff] %v2726_v27  ;;  %v974_v42 = vsub.f32 %v2704_v36, %v2716_v3  ;;  %v981_v57 = vsub.f32 %v2710_v54, %v2726_v27 }
  0x90   :  { %1974 = vmatprep.subr.mxu1 %v926_v53  ;;  %1947 = vmatprep.subr.mxu0 %v2652_v60  ;;  %v2686_v51 = vand.u32 4294901760, %v2677_v37  ;;  %2981 = vst [vmem:[#allocation12_spill] sm:$0xff] %v2698_v18  ;;  %v967_v55 = vsub.f32 %v2689_v56, %v2698_v18  ;;  %2984 = vst [vmem:[#allocation15_spill] sm:$0xff] %v2748_v62  ;;  %v996_v41 = vand.u32 4294901760, %v995_v50 }
  0x91   :  { %1975 = vmatpush3.msra.mxu1 %v926_v53  ;;  %1948 = vmatpush3.msra.mxu0 %v2652_v60  ;;  %v2743_v53 = vsub.f32 %v791_v15, %v2723_v20  ;;  %v975_v25 = vand.u32 4294901760, %v974_v42  ;;  %v982_v48 = vand.u32 4294901760, %v981_v57 }
  0x92   :  { %1976 = vmatprep.subr.mxu1 %v933_v1  ;;  %1949 = vmatprep.subr.mxu0 %v2665_v13  ;;  %2980 = vst [vmem:[#allocation11_spill] sm:$0xff] %v2686_v51  ;;  %v960_v12 = vsub.f32 %v2677_v37, %v2686_v51  ;;  %v968_v26 = vand.u32 4294901760, %v967_v55  ;;  %v1003_v55 = vand.u32 4294901760, %v1002_v2 }
  0x93   :  { %1977 = vmatpush3.msra.mxu1 %v933_v1  ;;  %1950 = vmatpush3.msra.mxu0 %v2665_v13  ;;  %v2752_v1 = vsub.f32 %v790_v21, %v2732_v39 }
  0x94   :  { %1978 = vmatprep.subr.mxu1 %v940_v40  ;;  %1951 = vmatprep.subr.mxu0 %v2679_v38  ;;  %v961_v44 = vand.u32 4294901760, %v960_v12 }
  0x95   :  { %1979 = vmatpush3.msra.mxu1 %v940_v40  ;;  %1952 = vmatpush3.msra.mxu0 %v2679_v38  ;;  %v2761_v40 = vand.u32 4294901760, %v2743_v53 }
  0x96   :  { %1980 = vmatprep.subr.mxu1 %v947_v49  ;;  %1953 = vmatprep.subr.mxu0 %v2692_v59 }
  0x97   :  { %1981 = vmatpush3.msra.mxu1 %v947_v49  ;;  %1954 = vmatpush3.msra.mxu0 %v2692_v59  ;;  %2987 = vst [vmem:[#allocation18_spill] sm:$0xff] %v2761_v40  ;;  %v988_v49 = vsub.f32 %v2729_v28, %v2748_v62 }
  0x98   :  { %1982 = vmatprep.subr.mxu1 %v954_v7  ;;  %1955 = vmatprep.subr.mxu0 %v2700_v35 }
  0x99   :  { %1983 = vmatpush3.msra.mxu1 %v954_v7  ;;  %1956 = vmatpush3.msra.mxu0 %v2700_v35  ;;  %v2772_v7 = vand.u32 4294901760, %v2752_v1  ;;  %v989_v12 = vand.u32 4294901760, %v988_v49 }
  0x9a   :  { %1984 = vmatprep.subr.mxu1 %v961_v44  ;;  %1957 = vmatprep.subr.mxu0 %v2712_v63 }
  0x9b   :  { %1985 = vmatpush3.msra.mxu1 %v961_v44  ;;  %1958 = vmatpush3.msra.mxu0 %v2712_v63  ;;  %2988 = vst [vmem:[#allocation19_spill] sm:$0xff] %v2772_v7  ;;  %v1009_v44 = vsub.f32 %v2743_v53, %v2761_v40  ;;  %v1016_v0 = vsub.f32 %v2752_v1, %v2772_v7 }
  0x9c   :  { %1986 = vmatprep.subr.mxu1 %v968_v26  ;;  %1959 = vmatprep.subr.mxu0 %v2718_v5 }
  0x9d   :  { %1987 = vmatpush3.msra.mxu1 %v968_v26  ;;  %1960 = vmatpush3.msra.mxu0 %v2718_v5  ;;  %v1010_v14 = vand.u32 4294901760, %v1009_v44  ;;  %v1017_v15 = vand.u32 4294901760, %v1016_v0  ;;  %v1508_v26 = vld [vmem:[%s2948_s2] ss:$0 sm:$0xff] }
  0x9e   :  { %1988 = vmatprep.subr.mxu1 %v975_v25  ;;  %1961 = vmatprep.subr.mxu0 %v2720_v11 }
  0x9f   :  { %1989 = vmatpush3.msra.mxu1 %v975_v25  ;;  %1962 = vmatpush3.msra.mxu0 %v2720_v11 }
  0xa0   :  { %1990 = vmatprep.subr.mxu1 %v982_v48  ;;  %1963 = vmatprep.subr.mxu0 %v2723_v20 }
  0xa1   :  { %1991 = vmatpush3.msra.mxu1 %v982_v48  ;;  %1964 = vmatpush3.msra.mxu0 %v2723_v20 }
  0xa2   :  { %1992 = vmatprep.subr.mxu1 %v989_v12  ;;  %1965 = vmatprep.subr.mxu0 %v2732_v39 }
  0xa3   :  { %1993 = vmatpush3.msra.mxu1 %v989_v12  ;;  %1966 = vmatpush3.msra.mxu0 %v2732_v39 }
  0xa4   :  { %1994 = vmatprep.subr.mxu1 %v996_v41  ;;  %2005 = vmatprep.subr.mxu0 %v2596_v9 }
  0xa5   :  { %1995 = vmatpush3.msra.mxu1 %v996_v41 }
  0xa6   :  { %1996 = vmatprep.subr.mxu1 %v1003_v55 }
  0xa7   :  { %1997 = vmatpush3.msra.mxu1 %v1003_v55 }
  0xa8   :  { %1998 = vmatprep.subr.mxu1 %v1010_v14 }
  0xa9   :  { %1999 = vmatpush3.msra.mxu1 %v1010_v14 }
  0xaa   :  { %2000 = vmatprep.subr.mxu1 %v1017_v15 }
  0xab   :  { %2001 = vmatpush3.msra.mxu1 %v1017_v15 }
  0xac   :  { %2040 = vmatprep.subr.mxu1 %v2593_v4 }
  0xff   :  { %v1759_v21 = vpop.f32.mrf.mxu0 }
 0x100   :  { %v184_v48 = vadd.f32 %v1759_v21, %v1508_v26 }
 0x101   :  { %v173_v42 = vpop.f32.mrf.mxu0 }
 0x102   :  { %v174_v50 = vadd.f32 %v1508_v26, %v173_v42 }
 0x107   :  { %v1794_v57 = vpop.f32.mrf.mxu1 }
 0x108   :  { %v341_v41 = vadd.f32 %v1794_v57, %v184_v48 }
 0x109   :  { %v334_v49 = vpop.f32.mrf.mxu1 }
 0x10a   :  { %v335_v55 = vadd.f32 %v334_v49, %v174_v50 }
 0x120   :  { %v1829_v25 = vpop.f32.mrf.mxu0 }
 0x121   :  { %v452_v0 = vadd.f32 %v1829_v25, %v341_v41 }
 0x122   :  { %v444_v2 = vpop.f32.mrf.mxu0 }
 0x123   :  { %v445_v15 = vadd.f32 %v444_v2, %v335_v55 }
 0x129   :  { %v1864_v12 = vpop.f32.mrf.mxu1 }
 0x12a   :  { %v549_v7 = vadd.f32 %v1864_v12, %v452_v0 }
 0x12b   :  { %v540_v14 = vpop.f32.mrf.mxu1 }
 0x12c   :  { %v541_v31 = vadd.f32 %v540_v14, %v445_v15 }
 0x142   :  { %v1899_v44 = vpop.f32.mrf.mxu0 }
 0x143   :  { %v674_v30 = vadd.f32 %v1899_v44, %v549_v7 }
 0x144   :  { %v667_v40 = vpop.f32.mrf.mxu0 }
 0x145   :  { %v668_v27 = vadd.f32 %v667_v40, %v541_v31 }
 0x14b   :  { %v1934_v62 = vpop.f32.mrf.mxu1 }
 0x14c   :  { %v767_v3 = vadd.f32 %v1934_v62, %v674_v30 }
 0x14d   :  { %v760_v18 = vpop.f32.mrf.mxu1 }
 0x14e   :  { %v771_v51 = vmul.f32 %v767_v3, %v767_v3  ;;  %v761_v21 = vadd.f32 %v760_v18, %v668_v27  ;;  %v775_v12 = vmul.f32 0.5, %v767_v3 }
 0x150   :  { %v773_v32 = vmul.f32 %v771_v51, %v767_v3  ;;  %v770_v26 = vmul.f32 %v761_v21, %v761_v21  ;;  %v774_v31 = vmul.f32 0.5, %v761_v21 }
 0x152   :  { %v777_v42 = vmul.f32 0.0044715, %v773_v32  ;;  %v772_v6 = vmul.f32 %v770_v26, %v761_v21 }
 0x154   :  { %v779_v57 = vadd.f32 %v777_v42, %v767_v3  ;;  %v776_v48 = vmul.f32 0.0044715, %v772_v6 }
 0x156   :  { %v781_v49 = vmul.f32 0.7978846, %v779_v57  ;;  %v778_v25 = vadd.f32 %v776_v48, %v761_v21 }
 0x158   :  { %2149 = vtanh.f32 %v781_v49  ;;  %v780_v50 = vmul.f32 0.7978846, %v778_v25 }
 0x15a   :  { %2151 = vtanh.f32 %v780_v50 }
 0x165   :  { %v2150_v2 = vpop.eup %2149 }
 0x166   :  { %v785_v7 = vadd.f32 1.0, %v2150_v2 }
 0x167   :  { %v2152_v41 = vpop.eup %2151 }
 0x168   :  { %v784_v62 = vadd.f32 1.0, %v2152_v41  ;;  %v787_v30 = vmul.f32 %v785_v7, %v775_v12 }
 0x16a   :  { %v786_v40 = vmul.f32 %v784_v62, %v774_v31  ;;  %v2790_v18 = vand.u32 4294901760, %v787_v30 }
 0x16c   :  { %v2792_v51 = vand.u32 4294901760, %v786_v40  ;;  %v2795_v32 = vsub.f32 %v787_v30, %v2790_v18 }
 0x16e   :  { %2002 = vmatprep.mubr.f32.mxu1 %v2792_v51  ;;  %v888_v6 = vsub.f32 %v786_v40, %v2792_v51  ;;  %v899_v27 = vand.u32 4294901760, %v2795_v32 }
 0x16f   :  { %2003 = vmatmul.mubr.f32.vlgmr.msra.gmra.mxu1 %v2790_v18 }
 0x170   :  { %2041 = vmatpush3.msra.mxu1 %v2593_v4  ;;  %v889_v3 = vand.u32 4294901760, %v888_v6  ;;  %v900_v44 = vsub.f32 %v2795_v32, %v899_v27 }
 0x171   :  { %2042 = vmatprep.subr.mxu1 %v2598_v10 }
 0x172   :  { %2043 = vmatpush3.msra.mxu1 %v2598_v10  ;;  %2072 = vmatprep.mubr.f32.mxu1 %v889_v3  ;;  %v890_v55 = vsub.f32 %v888_v6, %v889_v3  ;;  %v901_v14 = vand.u32 4294901760, %v900_v44 }
 0x173   :  { %2044 = vmatprep.subr.mxu1 %v2608_v19 }
 0x174   :  { %2045 = vmatpush3.msra.mxu1 %v2608_v19  ;;  %v891_v0 = vand.u32 4294901760, %v890_v55 }
 0x175   :  { %2046 = vmatprep.subr.mxu1 %v2620_v24 }
 0x176   :  { %2047 = vmatpush3.msra.mxu1 %v2620_v24  ;;  %1967 = vmatprep.mubr.f32.mxu0 %v891_v0 }
 0x177   :  { %2048 = vmatprep.subr.mxu1 %v2633_v34  ;;  %1968 = vmatmul.mubr.f32.vlgmr.msra.gmra.mxu0 %v901_v14 }
 0x178   :  { %2006 = vmatpush3.msra.mxu0 %v2596_v9  ;;  %2049 = vmatpush3.msra.mxu1 %v2633_v34  ;;  %v2990_v9 = vld [vmem:[#allocation10_spill] sm:$0xff] }
 0x179   :  { %2007 = vmatprep.subr.mxu0 %v2606_v17  ;;  %2037 = vmatprep.mubr.f32.mxu0 %v888_v6 }
 0x17a   :  { %2050 = vmatprep.subr.mxu1 %v2641_v46  ;;  %2008 = vmatpush3.msra.mxu0 %v2606_v17  ;;  %v2993_v17 = vld [vmem:[#allocation13_spill] sm:$0xff] }
 0x17b   :  { %2051 = vmatpush3.msra.mxu1 %v2641_v46  ;;  %2009 = vmatprep.subr.mxu0 %v2618_v23 }
 0x17c   :  { %2052 = vmatprep.subr.mxu1 %v2652_v60  ;;  %2010 = vmatpush3.msra.mxu0 %v2618_v23  ;;  %v2996_v23 = vld [vmem:[#allocation16_spill] sm:$0xff] }
 0x17d   :  { %2053 = vmatpush3.msra.mxu1 %v2652_v60  ;;  %2011 = vmatprep.subr.mxu0 %v2630_v33 }
 0x17e   :  { %2054 = vmatprep.subr.mxu1 %v2665_v13  ;;  %2012 = vmatpush3.msra.mxu0 %v2630_v33  ;;  %v2999_v33 = vld [vmem:[#allocation19_spill] sm:$0xff] }
 0x17f   :  { %2055 = vmatpush3.msra.mxu1 %v2665_v13  ;;  %2013 = vmatprep.subr.mxu0 %v2644_v47 }
 0x180   :  { %2056 = vmatprep.subr.mxu1 %v2679_v38  ;;  %2014 = vmatpush3.msra.mxu0 %v2644_v47 }
 0x181   :  { %2057 = vmatpush3.msra.mxu1 %v2679_v38  ;;  %2015 = vmatprep.subr.mxu0 %v2650_v58 }
 0x182   :  { %2058 = vmatprep.subr.mxu1 %v2692_v59  ;;  %2016 = vmatpush3.msra.mxu0 %v2650_v58 }
 0x183   :  { %2059 = vmatpush3.msra.mxu1 %v2692_v59  ;;  %2017 = vmatprep.subr.mxu0 %v2663_v8 }
 0x184   :  { %2060 = vmatprep.subr.mxu1 %v2700_v35  ;;  %2018 = vmatpush3.msra.mxu0 %v2663_v8 }
 0x185   :  { %2061 = vmatpush3.msra.mxu1 %v2700_v35  ;;  %2019 = vmatprep.subr.mxu0 %v2677_v37 }
 0x186   :  { %2062 = vmatprep.subr.mxu1 %v2712_v63  ;;  %2020 = vmatpush3.msra.mxu0 %v2677_v37 }
 0x187   :  { %2063 = vmatpush3.msra.mxu1 %v2712_v63  ;;  %2021 = vmatprep.subr.mxu0 %v2689_v56 }
 0x188   :  { %2064 = vmatprep.subr.mxu1 %v2718_v5  ;;  %2022 = vmatpush3.msra.mxu0 %v2689_v56 }
 0x189   :  { %2065 = vmatpush3.msra.mxu1 %v2718_v5  ;;  %2023 = vmatprep.subr.mxu0 %v2704_v36 }
 0x18a   :  { %2066 = vmatprep.subr.mxu1 %v2720_v11  ;;  %2024 = vmatpush3.msra.mxu0 %v2704_v36 }
 0x18b   :  { %2067 = vmatpush3.msra.mxu1 %v2720_v11  ;;  %2025 = vmatprep.subr.mxu0 %v2710_v54 }
 0x18c   :  { %2068 = vmatprep.subr.mxu1 %v2723_v20  ;;  %2026 = vmatpush3.msra.mxu0 %v2710_v54 }
 0x18d   :  { %2069 = vmatpush3.msra.mxu1 %v2723_v20  ;;  %2027 = vmatprep.subr.mxu0 %v2729_v28 }
 0x18e   :  { %2070 = vmatprep.subr.mxu1 %v2732_v39  ;;  %2028 = vmatpush3.msra.mxu0 %v2729_v28 }
 0x18f   :  { %2071 = vmatpush3.msra.mxu1 %v2732_v39  ;;  %2029 = vmatprep.subr.mxu0 %v2737_v43 }
 0x190   :  { %2073 = vmatmul.mubr.f32.vlgmr.msra.gmra.mxu1 %v899_v27  ;;  %2110 = vmatprep.subr.mxu1 %v2593_v4 }
 0x191   :  { %2030 = vmatpush3.msra.mxu0 %v2737_v43  ;;  %2111 = vmatpush3.msra.mxu1 %v2593_v4  ;;  %v2989_v4 = vld [vmem:[#allocation9_spill] sm:$0xff] }
 0x192   :  { %2142 = vmatprep.mubr.f32.mxu1 %v2792_v51  ;;  %2031 = vmatprep.subr.mxu0 %v2740_v52 }
 0x193   :  { %2112 = vmatprep.subr.mxu1 %v2598_v10  ;;  %2032 = vmatpush3.msra.mxu0 %v2740_v52 }
 0x194   :  { %2113 = vmatpush3.msra.mxu1 %v2598_v10  ;;  %2033 = vmatprep.subr.mxu0 %v2743_v53  ;;  %v2991_v10 = vld [vmem:[#allocation11_spill] sm:$0xff] }
 0x195   :  { %2114 = vmatprep.subr.mxu1 %v2608_v19  ;;  %2034 = vmatpush3.msra.mxu0 %v2743_v53 }
 0x196   :  { %2115 = vmatpush3.msra.mxu1 %v2608_v19  ;;  %2035 = vmatprep.subr.mxu0 %v2752_v1  ;;  %v2994_v19 = vld [vmem:[#allocation14_spill] sm:$0xff] }
 0x197   :  { %2116 = vmatprep.subr.mxu1 %v2620_v24  ;;  %2036 = vmatpush3.msra.mxu0 %v2752_v1 }
 0x198   :  { %2117 = vmatpush3.msra.mxu1 %v2620_v24  ;;  %2038 = vmatmul.mubr.f32.vlgmr.msra.gmra.mxu0 %v2795_v32  ;;  %v2997_v24 = vld [vmem:[#allocation17_spill] sm:$0xff] }
 0x199   :  { %2075 = vmatprep.subr.mxu0 %v2603_v16  ;;  %2118 = vmatprep.subr.mxu1 %v2633_v34 }
 0x19a   :  { %2076 = vmatpush3.msra.mxu0 %v2603_v16  ;;  %2107 = vmatprep.mubr.f32.mxu0 %v2792_v51  ;;  %v2992_v16 = vld [vmem:[#allocation12_spill] sm:$0xff] }
 0x19b   :  { %2119 = vmatpush3.msra.mxu1 %v2633_v34  ;;  %2077 = vmatprep.subr.mxu0 %v2615_v22 }
 0x19c   :  { %2120 = vmatprep.subr.mxu1 %v2641_v46  ;;  %2078 = vmatpush3.msra.mxu0 %v2615_v22  ;;  %v2995_v22 = vld [vmem:[#allocation15_spill] sm:$0xff] }
 0x19d   :  { %2121 = vmatpush3.msra.mxu1 %v2641_v46  ;;  %2079 = vmatprep.subr.mxu0 %v2627_v29 }
 0x19e   :  { %2122 = vmatprep.subr.mxu1 %v2652_v60  ;;  %2080 = vmatpush3.msra.mxu0 %v2627_v29  ;;  %v2998_v29 = vld [vmem:[#allocation18_spill] sm:$0xff] }
 0x19f   :  { %2123 = vmatpush3.msra.mxu1 %v2652_v60  ;;  %2081 = vmatprep.subr.mxu0 %v2639_v45 }
 0x1a0   :  { %2124 = vmatprep.subr.mxu1 %v2665_v13  ;;  %2082 = vmatpush3.msra.mxu0 %v2639_v45 }
 0x1a1   :  { %2125 = vmatpush3.msra.mxu1 %v2665_v13  ;;  %2083 = vmatprep.subr.mxu0 %v2656_v61 }
 0x1a2   :  { %2126 = vmatprep.subr.mxu1 %v2679_v38  ;;  %2084 = vmatpush3.msra.mxu0 %v2656_v61 }
 0x1a3   :  { %2127 = vmatpush3.msra.mxu1 %v2679_v38  ;;  %2085 = vmatprep.subr.mxu0 %v2989_v4 }
 0x1a4   :  { %2128 = vmatprep.subr.mxu1 %v2692_v59  ;;  %2086 = vmatpush3.msra.mxu0 %v2989_v4 }
 0x1a5   :  { %2129 = vmatpush3.msra.mxu1 %v2692_v59  ;;  %2087 = vmatprep.subr.mxu0 %v2990_v9 }
 0x1a6   :  { %2130 = vmatprep.subr.mxu1 %v2700_v35  ;;  %2088 = vmatpush3.msra.mxu0 %v2990_v9 }
 0x1a7   :  { %2131 = vmatpush3.msra.mxu1 %v2700_v35  ;;  %2089 = vmatprep.subr.mxu0 %v2991_v10 }
 0x1a8   :  { %2132 = vmatprep.subr.mxu1 %v2712_v63  ;;  %2090 = vmatpush3.msra.mxu0 %v2991_v10 }
 0x1a9   :  { %2133 = vmatpush3.msra.mxu1 %v2712_v63  ;;  %2091 = vmatprep.subr.mxu0 %v2992_v16 }
 0x1aa   :  { %2134 = vmatprep.subr.mxu1 %v2718_v5  ;;  %2092 = vmatpush3.msra.mxu0 %v2992_v16 }
 0x1ab   :  { %2135 = vmatpush3.msra.mxu1 %v2718_v5  ;;  %2093 = vmatprep.subr.mxu0 %v2993_v17  ;;  %v1507_v5 = vld [vmem:[%s2950_s4] ss:$0 sm:$0xff] }
 0x1ac   :  { %2136 = vmatprep.subr.mxu1 %v2720_v11  ;;  %2094 = vmatpush3.msra.mxu0 %v2993_v17 }
 0x1ad   :  { %2137 = vmatpush3.msra.mxu1 %v2720_v11  ;;  %2095 = vmatprep.subr.mxu0 %v2994_v19 }
 0x1ae   :  { %2138 = vmatprep.subr.mxu1 %v2723_v20  ;;  %2096 = vmatpush3.msra.mxu0 %v2994_v19 }
 0x1af   :  { %2139 = vmatpush3.msra.mxu1 %v2723_v20  ;;  %2097 = vmatprep.subr.mxu0 %v2995_v22 }
 0x1b0   :  { %2140 = vmatprep.subr.mxu1 %v2732_v39  ;;  %2098 = vmatpush3.msra.mxu0 %v2995_v22 }
 0x1b1   :  { %2141 = vmatpush3.msra.mxu1 %v2732_v39  ;;  %2099 = vmatprep.subr.mxu0 %v2996_v23 }
 0x1b2   :  { %2143 = vmatmul.mubr.f32.vlgmr.msra.gmra.mxu1 %v2790_v18  ;;  %2100 = vmatpush3.msra.mxu0 %v2996_v23 }
 0x1b3   :  { %2101 = vmatprep.subr.mxu0 %v2997_v24 }
 0x1b4   :  { %2102 = vmatpush3.msra.mxu0 %v2997_v24 }
 0x1b5   :  { %2103 = vmatprep.subr.mxu0 %v2998_v29 }
 0x1b6   :  { %2104 = vmatpush3.msra.mxu0 %v2998_v29 }
 0x1b7   :  { %2105 = vmatprep.subr.mxu0 %v2999_v33 }
 0x1b8   :  { %2106 = vmatpush3.msra.mxu0 %v2999_v33 }
 0x1b9   :  { %2108 = vmatmul.mubr.f32.vlgmr.msra.gmra.mxu0 %v2790_v18 }
 0x22f   :  { %v2004_v45 = vpop.f32.mrf.mxu1 }
 0x231   :  { %v1054_v58 = vpop.f32.mrf.mxu1 }
 0x237   :  { %v1969_v34 = vpop.f32.mrf.mxu0 }
 0x238   :  { %v1061_v60 = vadd.f32 %v2004_v45, %v1969_v34 }
 0x239   :  { %v893_v46 = vpop.f32.mrf.mxu0 }
 0x23a   :  { %v1055_v13 = vadd.f32 %v1054_v58, %v893_v46 }
 0x250   :  { %v2074_v61 = vpop.f32.mrf.mxu1 }
 0x252   :  { %v1260_v56 = vpop.f32.mrf.mxu1 }
 0x258   :  { %v2039_v47 = vpop.f32.mrf.mxu0 }
 0x259   :  { %v1172_v37 = vadd.f32 %v2039_v47, %v1061_v60 }
 0x25a   :  { %v1164_v8 = vpop.f32.mrf.mxu0 }
 0x25b   :  { %v1165_v38 = vadd.f32 %v1164_v8, %v1055_v13  ;;  %v1269_v59 = vadd.f32 %v2074_v61, %v1172_v37 }
 0x25d   :  { %v1261_v63 = vadd.f32 %v1260_v56, %v1165_v38 }
 0x272   :  { %v2144_v35 = vpop.f32.mrf.mxu1 }
 0x274   :  { %v1480_v39 = vpop.f32.mrf.mxu1 }
 0x279   :  { %v2109_v36 = vpop.f32.mrf.mxu0 }
 0x27a   :  { %v1394_v54 = vadd.f32 %v2109_v36, %v1269_v59 }
 0x27b   :  { %v1387_v11 = vpop.f32.mrf.mxu0 }
 0x27c   :  { %v1487_v20 = vadd.f32 %v2144_v35, %v1394_v54  ;;  %v1388_v28 = vadd.f32 %v1387_v11, %v1261_v63 }
 0x27e   :  { %v1491_v43 = vadd.f32 %v1507_v5, %v1487_v20  ;;  %v1481_v52 = vadd.f32 %v1480_v39, %v1388_v28 }
 0x280   :  { %1500 = vst [vmem:[%s2951_s5 + $0x8] sm:$0xff] %v1491_v43  ;;  %v1490_v53 = vadd.f32 %v1507_v5, %v1481_v52 }
 0x282   :  { %1499 = vst [vmem:[%s2951_s5] sm:$0xff] %v1490_v53 }
 0x283   :  { %1505 = vsyncpa [#allocation4], 1 }
 0x284   :  { %1506 = vsyncpa [#allocation6], 1 }

</bundles_post_ra>
